<compile_context>
chip_gen: v7x
topology: tpu7x:2x2x1
jax: 0.10.0
libtpu: 0.0.40
codegen_flags: <defaults>
</compile_context>

<pallas_src>
import functools

import jax
import jax.numpy as jnp
from jax import lax
from jax.experimental import pallas as pl
from jax.experimental.pallas import tpu as pltpu


def _channel_attention_kernel(x_ref, w1_ref, w2_ref, o_ref, sum_ref, max_ref,
                              *, hw_total, inv_hw, needs_mask):
    # x_ref  : (TB, C, t_hw) spatial tile of TB batch elements (input dtype)
    # w1_ref : (HID, C)   fc1 weight (natural layout, C on lanes)
    # w2_ref : (C, HID)   fc2 weight (natural layout)
    # o_ref  : (TB, C)    sigmoid(channel attention)
    # sum_ref/max_ref : (TB, C) f32 running accumulators (VMEM scratch)
    hw_i = pl.program_id(1)
    n_hw = pl.num_programs(1)

    @pl.when(hw_i == 0)
    def _init():
        sum_ref[...] = jnp.zeros_like(sum_ref)
        max_ref[...] = jnp.full_like(max_ref, -jnp.inf)

    x = x_ref[...].astype(jnp.float32)            # (TB, C, t_hw), f32 accumulate
    t_hw = x.shape[-1]

    if needs_mask:
        # Last spatial tile may extend past HW: mask the padded lanes.
        lane = lax.broadcasted_iota(jnp.int32, (1, 1, t_hw), 2)
        valid = (hw_i * t_hw + lane) < hw_total
        x_sum = jnp.where(valid, x, 0.0)
        x_max = jnp.where(valid, x, -jnp.inf)
    else:
        x_sum = x
        x_max = x

    sum_ref[...] += jnp.sum(x_sum, axis=-1)                       # (TB, C)
    max_ref[...] = jnp.maximum(max_ref[...], jnp.max(x_max, axis=-1))

    @pl.when(hw_i == n_hw - 1)
    def _finish():
        avg = sum_ref[...] * jnp.float32(inv_hw)                  # true mean over HW
        mx = max_ref[...]
        pooled = jnp.concatenate([avg, mx], axis=0)               # (2*TB, C)

        w1 = w1_ref[...]                                          # (HID, C)
        w2 = w2_ref[...]                                          # (C, HID)
        # h = pooled @ w1^T  (contract last dims)  -> (2*TB, HID)
        h = lax.dot_general(pooled, w1, (((1,), (1,)), ((), ())),
                            preferred_element_type=jnp.float32)
        h = jnp.maximum(h, 0.0)                                   # ReLU
        # out = h @ w2^T  -> (2*TB, C)
        out = lax.dot_general(h, w2, (((1,), (1,)), ((), ())),
                              preferred_element_type=jnp.float32)

        tb = avg.shape[0]
        o_ref[...] = jax.nn.sigmoid(out[:tb] + out[tb:]).astype(o_ref.dtype)


def channel_attention(x, w1, w2, *, vmem_budget_per_buf=4 * 1024 * 1024):
    """x: (B, C, H, W) NCHW (f32 or bf16).
    w1: (HID, C, 1, 1) fc1 conv weight; w2: (C, HID, 1, 1) fc2 conv weight.
    Returns (B, C, 1, 1), matching the PyTorch module."""
    B, C, H, W = x.shape
    HID = w1.shape[0]
    HW = H * W
    itemsize = jnp.dtype(x.dtype).itemsize

    # Batch tile: must divide B and be either == B or a multiple of 8
    # (sublane rule on the (TB, C) output block).
    if B % 16 == 0:
        TB = 16
    elif B % 8 == 0:
        TB = 8
    else:
        TB = B

    # Spatial tile: full HW if it fits the per-buffer budget, else a multiple of 128
    # lanes sized so double-buffered x stays within a few MiB (safe on v5e/v6e/v7x).
    full_bytes = TB * C * HW * itemsize
    if full_bytes <= vmem_budget_per_buf:
        t_hw = HW
    else:
        t = vmem_budget_per_buf // (TB * C * itemsize)
        t_hw = max(128, (t // 128) * 128)
    n_hw = pl.cdiv(HW, t_hw)
    needs_mask = (HW % t_hw) != 0

    # Free reshapes (contiguous NCHW / conv weights); no HBM transpose pass.
    x_flat = x.reshape(B, C, HW)
    w1m = w1.reshape(HID, C).astype(jnp.float32)
    w2m = w2.reshape(C, HID).astype(jnp.float32)

    x_block_bytes = TB * C * t_hw * itemsize
    vmem_limit = int(max(32 * 1024 * 1024,           # raise v5e's 16 MiB default
                         2 * x_block_bytes + 4 * 1024 * 1024))

    kernel = functools.partial(_channel_attention_kernel,
                               hw_total=HW, inv_hw=1.0 / HW, needs_mask=needs_mask)

    out = pl.pallas_call(
        kernel,
        out_shape=jax.ShapeDtypeStruct((B, C), x.dtype),
        grid_spec=pltpu.PrefetchScalarGridSpec(
            num_scalar_prefetch=0,
            grid=(B // TB, n_hw),                    # (batch-parallel, HW-reduction)
            in_specs=[
                pl.BlockSpec((TB, C, t_hw), lambda b, s: (b, 0, s)),
                pl.BlockSpec((HID, C), lambda b, s: (0, 0)),
                pl.BlockSpec((C, HID), lambda b, s: (0, 0)),
            ],
            out_specs=pl.BlockSpec((TB, C), lambda b, s: (b, 0)),
            scratch_shapes=[pltpu.VMEM((TB, C), jnp.float32),    # running sum
                            pltpu.VMEM((TB, C), jnp.float32)],   # running max
        ),
        compiler_params=pltpu.CompilerParams(
            dimension_semantics=("parallel", "arbitrary"),
            vmem_limit_bytes=vmem_limit,
        ),
    )(x_flat, w1m, w2m)

    return out.reshape(B, C, 1, 1)


def _reference(x, w1, w2):
    # Pure-JAX reference mirroring the PyTorch forward.
    B, C, H, W = x.shape
    HID = w1.shape[0]
    w1m = w1.reshape(HID, C).astype(jnp.float32)
    w2m = w2.reshape(C, HID).astype(jnp.float32)
    xf = x.astype(jnp.float32)
    avg = jnp.mean(xf, axis=(2, 3))          # (B, C)
    mx = jnp.max(xf, axis=(2, 3))            # (B, C)

    def mlp(v):
        h = jnp.maximum(v @ w1m.T, 0.0)
        return h @ w2m.T

    return jax.nn.sigmoid(mlp(avg) + mlp(mx)).reshape(B, C, 1, 1)


if __name__ == "__main__":
    # Small but valid shapes: in_planes must be divisible by the hard-coded ratio 16.
    B, C, H, W = 2, 64, 16, 16
    HID = C // 16

    key = jax.random.PRNGKey(0)
    kx, k1, k2 = jax.random.split(key, 3)
    x = jax.random.normal(kx, (B, C, H, W), dtype=jnp.float32)
    # Deterministic synthetic conv weights (shapes match nn.Conv2d(..., 1, bias=False)).
    w1 = jax.random.normal(k1, (HID, C, 1, 1), dtype=jnp.float32) * 0.1
    w2 = jax.random.normal(k2, (C, HID, 1, 1), dtype=jnp.float32) * 0.1

    out = jax.block_until_ready(channel_attention(x, w1, w2))
    ref = _reference(x, w1, w2)

    assert out.shape == (B, C, 1, 1), out.shape
    err = float(jnp.max(jnp.abs(out.astype(jnp.float32) - ref)))
    assert jnp.allclose(out.astype(jnp.float32), ref, atol=1e-5, rtol=1e-5), err
    print("KERNEL_OK")
</pallas_src>

<mosaic_0001>
module attributes {stable_mosaic.version = 11 : i64} {
  func.func @_channel_attention_kernel(%arg0: i32, %arg1: i32, %arg2: memref<2x64x256xf32, #tpu.memory_space<vmem>>, %arg3: memref<4x64xf32, #tpu.memory_space<vmem>>, %arg4: memref<64x4xf32, #tpu.memory_space<vmem>>, %arg5: memref<2x64xf32, #tpu.memory_space<vmem>>, %arg6: memref<2x64xf32, #tpu.memory_space<vmem>>, %arg7: memref<2x64xf32, #tpu.memory_space<vmem>>) attributes {dimension_semantics = [#tpu.dimension_semantics<parallel>, #tpu.dimension_semantics<arbitrary>], iteration_bounds = array<i64: 1, 1>, scalar_prefetch = 0 : i64, scratch_operands = 2 : i64, tpu.core_type = #tpu.core_type<tc>, window_params = [{transform_indices = @transform_0, window_bounds = array<i64: 2, 64, 256>}, {pipeline_mode = #tpu.pipeline_mode<synchronous>, transform_indices = @transform_1, window_bounds = array<i64: 4, 64>}, {pipeline_mode = #tpu.pipeline_mode<synchronous>, transform_indices = @transform_2, window_bounds = array<i64: 64, 4>}, {transform_indices = @transform_3, window_bounds = array<i64: 2, 64>}]} {
    %c0_i32 = arith.constant 0 : i32
    %0 = arith.cmpi eq, %arg1, %c0_i32 : i32
    %1 = arith.extui %0 : i1 to i32
    %c0_i32_0 = arith.constant 0 : i32
    %2 = arith.cmpi ne, %1, %c0_i32_0 : i32
    scf.if %2 {
      %cst_14 = arith.constant 0.000000e+00 : f32
      %15 = vector.broadcast %cst_14 : f32 to vector<2x64xf32>
      %c0_15 = arith.constant 0 : index
      %c0_16 = arith.constant 0 : index
      %16 = vector.load %arg6[%c0_15, %c0_16] : memref<2x64xf32, #tpu.memory_space<vmem>>, vector<2x64xf32>
      tpu.vector_store %arg6[%c0_15, %c0_16], %15 {strides = array<i32>} : memref<2x64xf32, #tpu.memory_space<vmem>>, vector<2x64xf32>,
      %cst_17 = arith.constant 0xFF800000 : f32
      %17 = vector.broadcast %cst_17 : f32 to vector<2x64xf32>
      %c0_18 = arith.constant 0 : index
      %c0_19 = arith.constant 0 : index
      %18 = vector.load %arg7[%c0_18, %c0_19] : memref<2x64xf32, #tpu.memory_space<vmem>>, vector<2x64xf32>
      tpu.vector_store %arg7[%c0_18, %c0_19], %17 {strides = array<i32>} : memref<2x64xf32, #tpu.memory_space<vmem>>, vector<2x64xf32>,
    } else {
    }
    %c0 = arith.constant 0 : index
    %c0_1 = arith.constant 0 : index
    %c0_2 = arith.constant 0 : index
    %3 = vector.load %arg2[%c0, %c0_1, %c0_2] : memref<2x64x256xf32, #tpu.memory_space<vmem>>, vector<2x64x256xf32>
    %c0_3 = arith.constant 0 : index
    %c0_4 = arith.constant 0 : index
    %4 = vector.load %arg6[%c0_3, %c0_4] : memref<2x64xf32, #tpu.memory_space<vmem>>, vector<2x64xf32>
    %cst = arith.constant dense<0.000000e+00> : vector<2x64xf32>
    %5 = vector.multi_reduction <add>, %3, %cst [2] : vector<2x64x256xf32> to vector<2x64xf32>
    %6 = arith.addf %4, %5 : vector<2x64xf32>
    %c0_5 = arith.constant 0 : index
    %c0_6 = arith.constant 0 : index
    %7 = vector.load %arg6[%c0_5, %c0_6] : memref<2x64xf32, #tpu.memory_space<vmem>>, vector<2x64xf32>
    tpu.vector_store %arg6[%c0_5, %c0_6], %6 {strides = array<i32>} : memref<2x64xf32, #tpu.memory_space<vmem>>, vector<2x64xf32>,
    %c0_7 = arith.constant 0 : index
    %c0_8 = arith.constant 0 : index
    %8 = vector.load %arg7[%c0_7, %c0_8] : memref<2x64xf32, #tpu.memory_space<vmem>>, vector<2x64xf32>
    %cst_9 = arith.constant dense<0xFF800000> : vector<2x64xf32>
    %9 = vector.multi_reduction <maximumf>, %3, %cst_9 [2] : vector<2x64x256xf32> to vector<2x64xf32>
    %10 = arith.maximumf %8, %9 : vector<2x64xf32>
    %c0_10 = arith.constant 0 : index
    %c0_11 = arith.constant 0 : index
    %11 = vector.load %arg7[%c0_10, %c0_11] : memref<2x64xf32, #tpu.memory_space<vmem>>, vector<2x64xf32>
    tpu.vector_store %arg7[%c0_10, %c0_11], %10 {strides = array<i32>} : memref<2x64xf32, #tpu.memory_space<vmem>>, vector<2x64xf32>,
    %c0_i32_12 = arith.constant 0 : i32
    %12 = arith.cmpi eq, %arg1, %c0_i32_12 : i32
    %13 = arith.extui %12 : i1 to i32
    %c0_i32_13 = arith.constant 0 : i32
    %14 = arith.cmpi ne, %13, %c0_i32_13 : i32
    scf.if %14 {
      %c0_14 = arith.constant 0 : index
      %c0_15 = arith.constant 0 : index
      %15 = vector.load %arg6[%c0_14, %c0_15] : memref<2x64xf32, #tpu.memory_space<vmem>>, vector<2x64xf32>
      %cst_16 = arith.constant 3.906250e-03 : f32
      %16 = vector.broadcast %cst_16 : f32 to vector<2x64xf32>
      %17 = arith.mulf %15, %16 : vector<2x64xf32>
      %c0_17 = arith.constant 0 : index
      %c0_18 = arith.constant 0 : index
      %18 = vector.load %arg7[%c0_17, %c0_18] : memref<2x64xf32, #tpu.memory_space<vmem>>, vector<2x64xf32>
      %19 = tpu.concatenate %17, %18 in 0 : vector<2x64xf32>, vector<2x64xf32> -> vector<4x64xf32>
      %c0_19 = arith.constant 0 : index
      %c0_20 = arith.constant 0 : index
      %20 = vector.load %arg3[%c0_19, %c0_20] : memref<4x64xf32, #tpu.memory_space<vmem>>, vector<4x64xf32>
      %c0_21 = arith.constant 0 : index
      %c0_22 = arith.constant 0 : index
      %21 = vector.load %arg4[%c0_21, %c0_22] : memref<64x4xf32, #tpu.memory_space<vmem>>, vector<64x4xf32>
      %cst_23 = arith.constant dense<0.000000e+00> : vector<4x4xf32>
      %22 = tpu.matmul %19, %20, %cst_23 {dimension_numbers = #tpu.dot_dimension_numbers<[1], [1], [0], [0], [0, 0, 1, 0], [], []>} : vector<4x64xf32>, vector<4x64xf32>, vector<4x4xf32> -> vector<4x4xf32>
      %cst_24 = arith.constant 0.000000e+00 : f32
      %23 = vector.broadcast %cst_24 : f32 to vector<4x4xf32>
      %24 = arith.maximumf %22, %23 : vector<4x4xf32>
      %cst_25 = arith.constant dense<0.000000e+00> : vector<4x64xf32>
      %25 = tpu.matmul %24, %21, %cst_25 {dimension_numbers = #tpu.dot_dimension_numbers<[1], [1], [0], [0], [0, 0, 1, 0], [], []>} : vector<4x4xf32>, vector<64x4xf32>, vector<4x64xf32> -> vector<4x64xf32>
      %26 = vector.extract_strided_slice %25 {offsets = [0, 0], sizes = [2, 64], strides = [1, 1]} : vector<4x64xf32> to vector<2x64xf32>
      %27 = vector.extract_strided_slice %25 {offsets = [2, 0], sizes = [2, 64], strides = [1, 1]} : vector<4x64xf32> to vector<2x64xf32>
      %28 = arith.addf %26, %27 : vector<2x64xf32>
      %29 = arith.negf %28 : vector<2x64xf32>
      %30 = math.exp %29 : vector<2x64xf32>
      %cst_26 = arith.constant 1.000000e+00 : f32
      %31 = vector.broadcast %cst_26 : f32 to vector<2x64xf32>
      %32 = arith.addf %31, %30 : vector<2x64xf32>
      %33 = arith.divf %31, %32 : vector<2x64xf32>
      %c0_27 = arith.constant 0 : index
      %c0_28 = arith.constant 0 : index
      %34 = vector.load %arg5[%c0_27, %c0_28] : memref<2x64xf32, #tpu.memory_space<vmem>>, vector<2x64xf32>
      tpu.vector_store %arg5[%c0_27, %c0_28], %33 {strides = array<i32>} : memref<2x64xf32, #tpu.memory_space<vmem>>, vector<2x64xf32>,
    } else {
    }
    return
  }
  func.func @transform_0(%arg0: i32, %arg1: i32) -> (i32, i32, i32) {
    %c0_i32 = arith.constant 0 : i32
    %c0_i32_0 = arith.constant 0 : i32
    return %arg0, %c0_i32, %arg1 : i32, i32, i32
  }
  func.func @transform_1(%arg0: i32, %arg1: i32) -> (i32, i32) {
    %c0_i32 = arith.constant 0 : i32
    %c0_i32_0 = arith.constant 0 : i32
    %c0_i32_1 = arith.constant 0 : i32
    return %c0_i32, %c0_i32_0 : i32, i32
  }
  func.func @transform_2(%arg0: i32, %arg1: i32) -> (i32, i32) {
    %c0_i32 = arith.constant 0 : i32
    %c0_i32_0 = arith.constant 0 : i32
    %c0_i32_1 = arith.constant 0 : i32
    return %c0_i32, %c0_i32_0 : i32, i32
  }
  func.func @transform_3(%arg0: i32, %arg1: i32) -> (i32, i32) {
    %c0_i32 = arith.constant 0 : i32
    %c0_i32_0 = arith.constant 0 : i32
    return %arg0, %c0_i32 : i32, i32
  }
}

</mosaic_0001>

<bundles_post_ra>
// kernel: tpu_custom_call.1
= control target key start
LH: loop header
LB: loop body
LE: loop exit
PB: predicated region body
PF: predicated region fallthrough
CT: control target
= control target key end

     0   :  { %8 = vsyncpa [#allocation5], 0  ;;  %s958_s0 = inlined_call_operand.hbm [shape: f32[2,64,256], index: 0, kind: input, shape index: {}]   ;;  %s959_s1 = inlined_call_operand.vmem [shape: f32[4,64], index: 1, kind: input, shape index: {}]   ;;  %s960_s2 = inlined_call_operand.vmem [shape: f32[64,4], index: 2, kind: input, shape index: {}]   ;;  %s961_s3 = inlined_call_operand.hbm [shape: f32[2,64], index: 3, kind: output, shape index: {}]  }
   0x1   :  { %9 = vsyncpa [#allocation6], 0  ;;  %s725_s12 = smov [#allocation4]   ;;  %s677_s16 = scalar_lea.hbm %s958_s0, 4096 }
   0x2   :  { %s15_s13 = sshll.u32 %s725_s12, 4  ;;  %p678_p0 = scmp.ne.s32.totalorder %s958_s0, %s677_s16  ;;  %s16_s13 = int_to_ptr.vmem [resolvable:$true] %s15_s13 }
   0x3   :  { %p681_p1 = scmp.lt.u32.totalorder %s677_s16, %s958_s0 }
   0x5   :  { %p683_p2 = pnand %p681_p1, %p678_p0 }
   0x7   :  { %686 = shalt.err (!%p683_p2)
}
   0x8   :  { %s687_s21 = scalar_lea.vmem %s16_s13, 4096  ;;  %p692_p4 = scmp.lt.s32.totalorder %s16_s13, %s16_s13 }
   0x9   :  { %p688_p3 = scmp.ne.s32.totalorder %s16_s13, %s687_s21  ;;  %p693_p5 = scmp.lt.s32.totalorder %s687_s21, %s687_s21 }
   0xb   :  { %p694_p6 = por %p693_p5, %p692_p4 }
   0xd   :  { %p695_p7 = pnand %p694_p6, %p688_p3 }
   0xf   :  { %698 = shalt.err (!%p695_p7)
}
  0x10   :  { %s726_s22 = smov 256   ;;  %s727_s23 = smov 16  }
  0x11   :  { %21 = dma.hbm_to_vmem [thread:$0]  %s958_s0, 4096, %s16_s13, [#allocation5], %s726_s22, %s726_s22, %s727_s23  }
  0x12   :  { %721 = dma.done.wait [#allocation5], 4096  }
  0x13   :  { %722 = vsyncadd [#allocation5], 4294963200  ;;  %v52_v0 = vld [vmem:[#allocation4 + $0x80] sm:$0xff]  ;;  %v53_v1 = vld [vmem:[#allocation4 + $0x88] sm:$0xff]  ;;  %vm33_vm0 = vcmask 517120   ;;  %vm400_vm1 = vcmask 523264  }
  0x14   :  { %v36_v2 = vld [vmem:[#allocation4] sm:$0xff]  ;;  %v93_v3 = vadd.f32 %v53_v1, %v52_v0  ;;  %v37_v4 = vld [vmem:[#allocation4 + $0x8] sm:$0xff]  ;;  %v54_v5 = vld [vmem:[#allocation4 + $0x90] sm:$0xff]  ;;  %v258_v15 = vmax.f32 %v52_v0, %v53_v1  ;;  %v728_v0 = vmov 0.0   ;;  %v729_v1 = vmov -inf  }
  0x15   :  { %v55_v6 = vld [vmem:[#allocation4 + $0x98] sm:$0xff]  ;;  %v69_v7 = vadd.f32 %v37_v4, %v36_v2  ;;  %v38_v8 = vld [vmem:[#allocation4 + $0x10] sm:$0xff]  ;;  %v234_v13 = vmax.f32 %v36_v2, %v37_v4  ;;  %v56_v16 = vld [vmem:[#allocation4 + $0xa0] sm:$0xff]  ;;  %34 = vst.msk [vmem:[#allocation2] sm:$0x3] %vm33_vm0, %v728_v0  ;;  %625 = vmatprep.subr.mxu0 %v728_v0  ;;  %vm730_vm2 = vmmov 0  }
  0x16   :  { %v39_v9 = vld [vmem:[#allocation4 + $0x18] sm:$0xff]  ;;  %94 = vadd.xlane.f32.xlu1 %v93_v3  ;;  %v96_v10 = vadd.f32 %v55_v6, %v54_v5  ;;  %v261_v14 = vmax.f32 %v54_v5, %v55_v6  ;;  %v57_v17 = vld [vmem:[#allocation4 + $0xa8] sm:$0xff]  ;;  %v40_v18 = vld [vmem:[#allocation4 + $0x20] sm:$0xff]  ;;  %35 = vst.msk [vmem:[#allocation3] sm:$0x3] %vm33_vm0, %v729_v1  ;;  %627 = vmatprep.mubr.msk.f32.mxu0 %vm730_vm2, %v728_v0  ;;  %vm478_vm3 = vcmask 31744  }
  0x17   :  { %70 = vadd.xlane.f32.xlu0 %v69_v7  ;;  %v72_v11 = vadd.f32 %v39_v9, %v38_v8  ;;  %v237_v12 = vmax.f32 %v38_v8, %v39_v9  ;;  %v41_v19 = vld [vmem:[#allocation4 + $0x28] sm:$0xff]  ;;  %v99_v20 = vadd.f32 %v57_v17, %v56_v16  ;;  %v264_v22 = vmax.f32 %v56_v16, %v57_v17  ;;  %v58_v24 = vld [vmem:[#allocation4 + $0xb0] sm:$0xff]  ;;  %v59_v25 = vld [vmem:[#allocation4 + $0xb8] sm:$0xff] }
  0x18   :  { %v75_v21 = vadd.f32 %v41_v19, %v40_v18  ;;  %v240_v23 = vmax.f32 %v40_v18, %v41_v19  ;;  %v42_v26 = vld [vmem:[#allocation4 + $0x30] sm:$0xff]  ;;  %v43_v27 = vld [vmem:[#allocation4 + $0x38] sm:$0xff]  ;;  %v102_v28 = vadd.f32 %v59_v25, %v58_v24  ;;  %v267_v30 = vmax.f32 %v58_v24, %v59_v25  ;;  %v60_v32 = vld [vmem:[#allocation4 + $0xc0] sm:$0xff]  ;;  %646 = vmatprep.mubr.msk.f32.mxu1 %vm730_vm2, %v728_v0 }
  0x19   :  { %v78_v29 = vadd.f32 %v43_v27, %v42_v26  ;;  %v243_v31 = vmax.f32 %v42_v26, %v43_v27  ;;  %v61_v33 = vld [vmem:[#allocation4 + $0xc8] sm:$0xff]  ;;  %v44_v34 = vld [vmem:[#allocation4 + $0x40] sm:$0xff]  ;;  %v62_v40 = vld [vmem:[#allocation4 + $0xd0] sm:$0xff]  ;;  %v731_v5 = vmov 0.0|0.0   ;;  %vm144_vm5 = vcmask 130112  }
  0x1a   :  { %97 = vadd.xlane.f32.xlu1 %v96_v10  ;;  %v45_v35 = vld [vmem:[#allocation4 + $0x48] sm:$0xff]  ;;  %v105_v36 = vadd.f32 %v61_v33, %v60_v32  ;;  %v270_v38 = vmax.f32 %v60_v32, %v61_v33  ;;  %v63_v41 = vld [vmem:[#allocation4 + $0xd8] sm:$0xff]  ;;  %v46_v42 = vld [vmem:[#allocation4 + $0x50] sm:$0xff]  ;;  %649 = vmatprep.subr.bf16.mxu1 %v731_v5  ;;  %vm151_vm6 = vcmask 195712   ;;  %vm158_vm7 = vcmask 261312  }
  0x1b   :  { %73 = vadd.xlane.f32.xlu0 %v72_v11  ;;  %v81_v37 = vadd.f32 %v45_v35, %v44_v34  ;;  %v246_v39 = vmax.f32 %v44_v34, %v45_v35  ;;  %v47_v43 = vld [vmem:[#allocation4 + $0x58] sm:$0xff]  ;;  %v108_v44 = vadd.f32 %v63_v41, %v62_v40  ;;  %v273_v46 = vmax.f32 %v62_v40, %v63_v41  ;;  %v64_v48 = vld [vmem:[#allocation4 + $0xe0] sm:$0xff]  ;;  %v65_v49 = vld [vmem:[#allocation4 + $0xe8] sm:$0xff] }
  0x1c   :  { %v84_v45 = vadd.f32 %v47_v43, %v46_v42  ;;  %v249_v47 = vmax.f32 %v46_v42, %v47_v43  ;;  %v48_v50 = vld [vmem:[#allocation4 + $0x60] sm:$0xff]  ;;  %v49_v51 = vld [vmem:[#allocation4 + $0x68] sm:$0xff]  ;;  %v111_v52 = vadd.f32 %v65_v49, %v64_v48  ;;  %v276_v54 = vmax.f32 %v64_v48, %v65_v49  ;;  %v66_v56 = vld [vmem:[#allocation4 + $0xf0] sm:$0xff] }
  0x1d   :  { %v87_v53 = vadd.f32 %v49_v51, %v48_v50  ;;  %v252_v55 = vmax.f32 %v48_v50, %v49_v51  ;;  %v67_v57 = vld [vmem:[#allocation4 + $0xf8] sm:$0xff]  ;;  %v50_v58 = vld [vmem:[#allocation4 + $0x70] sm:$0xff]  ;;  %v393_v4 = vld [vmem:[%s960_s2 + $0x8] sm:$0xff]  ;;  %v133_v34 = vlaneseq  ;;  %vm165_vm8 = vcmask 326912  }
  0x1e   :  { %238 = vmax.xlane.f32.xlu1 %v237_v12  ;;  %v51_v59 = vld [vmem:[#allocation4 + $0x78] sm:$0xff]  ;;  %v114_v60 = vadd.f32 %v67_v57, %v66_v56  ;;  %v279_v62 = vmax.f32 %v66_v56, %v67_v57  ;;  %vm779_vm4 = vmpackc.low %vm478_vm3, %vm478_vm3  ;;  %v394_v8 = vld [vmem:[%s960_s2 + $0x10] sm:$0xff]  ;;  %vm172_vm9 = vcmask 392512   ;;  %vm179_vm10 = vcmask 458112  }
  0x1f   :  { %235 = vmax.xlane.f32.xlu0 %v234_v13  ;;  %v90_v61 = vadd.f32 %v51_v59, %v50_v58  ;;  %v255_v63 = vmax.f32 %v50_v58, %v51_v59  ;;  %v391_v2 = vld [vmem:[%s959_s1] sm:$0xf]  ;;  %v395_v9 = vld [vmem:[%s960_s2 + $0x18] sm:$0xff]  ;;  %v397_v12 = vld [vmem:[%s960_s2 + $0x28] sm:$0xff]  ;;  %v136_v40 = vshrl.u32 %v133_v34, 7  ;;  %vm186_vm11 = vcmask 523712  }
  0x20   :  { %626 = vmatpush3.xpose.msk.msra.mxu0 %vm400_vm1, %v391_v2  ;;  %v392_v3 = vld [vmem:[%s960_s2] sm:$0xff]  ;;  %v654_v10 = vpack.c.bf16 %v395_v9, %v394_v8  ;;  %vm227_vm12 = vcmask 1041409   ;;  %vm389_vm13 = vcmask 1041408  }
  0x21   :  { %v650_v6 = vpack.c.bf16 %v393_v4, %v392_v3  ;;  %v396_v11 = vld [vmem:[%s960_s2 + $0x20] sm:$0xff] }
  0x22   :  { %262 = vmax.xlane.f32.xlu1 %v261_v14  ;;  %v658_v13 = vpack.c.bf16 %v397_v12, %v396_v11  ;;  %v398_v14 = vld [vmem:[%s960_s2 + $0x30] sm:$0xff] }
  0x23   :  { %259 = vmax.xlane.f32.xlu0 %v258_v15  ;;  %652 = vmatpush3.bf16.xpose.msk.msra.mxu1 %vm779_vm4, %v650_v6  ;;  %v399_v15 = vld [vmem:[%s960_s2 + $0x38] sm:$0xff]  ;;  %s732_s2 = smov [#allocation7]  }
  0x24   :  { %653 = vmatprep.subr.bf16.mxu1 %v731_v5  ;;  %v662_v16 = vpack.c.bf16 %v399_v15, %v398_v14  ;;  %s593_s15 = sshll.u32 %s732_s2, 4  ;;  %s594_s15 = int_to_ptr.vmem [resolvable:$true] %s593_s15 }
  0x25   :  { %s699_s16 = scalar_lea.vmem %s594_s15, 32  ;;  %p704_p9 = scmp.lt.s32.totalorder %s594_s15, %s594_s15 }
  0x26   :  { %100 = vadd.xlane.f32.xlu1 %v99_v20  ;;  %p700_p8 = scmp.ne.s32.totalorder %s594_s15, %s699_s16  ;;  %p705_p10 = scmp.lt.s32.totalorder %s699_s16, %s699_s16 }
  0x27   :  { %76 = vadd.xlane.f32.xlu0 %v75_v21 }
  0x28   :  { %p706_p11 = por %p705_p10, %p704_p9 }
  0x2a   :  { %265 = vmax.xlane.f32.xlu1 %v264_v22  ;;  %p707_p12 = pnand %p706_p11, %p700_p8 }
  0x2b   :  { %241 = vmax.xlane.f32.xlu0 %v240_v23  ;;  %656 = vmatpush3.bf16.xpose.msk.msra.mxu1 %vm779_vm4, %v654_v10 }
  0x2c   :  { %657 = vmatprep.subr.bf16.mxu1 %v731_v5 }
  0x2e   :  { %103 = vadd.xlane.f32.xlu1 %v102_v28 }
  0x2f   :  { %79 = vadd.xlane.f32.xlu0 %v78_v29 }
  0x32   :  { %268 = vmax.xlane.f32.xlu1 %v267_v30 }
  0x33   :  { %244 = vmax.xlane.f32.xlu0 %v243_v31  ;;  %660 = vmatpush3.bf16.xpose.msk.msra.mxu1 %vm779_vm4, %v658_v13 }
  0x34   :  { %661 = vmatprep.subr.bf16.mxu1 %v731_v5 }
  0x36   :  { %106 = vadd.xlane.f32.xlu1 %v105_v36 }
  0x37   :  { %82 = vadd.xlane.f32.xlu0 %v81_v37  ;;  %v134_v37 = vand.u32 127, %v133_v34 }
  0x39   :  { %v146_v41 = vadd.s32 4294967280, %v134_v37  ;;  %v153_v43 = vadd.s32 4294967272, %v134_v37  ;;  %v181_v49 = vadd.s32 4294967240, %v134_v37  ;;  %v137_v50 = vsub.s32 %v134_v37, %v136_v40 }
  0x3a   :  { %271 = vmax.xlane.f32.xlu1 %v270_v38 }
  0x3b   :  { %247 = vmax.xlane.f32.xlu0 %v246_v39  ;;  %664 = vmatpush3.bf16.xpose.msk.msra.mxu1 %vm779_vm4, %v662_v16  ;;  %v139_v39 = vadd.s32 4294967288, %v134_v37  ;;  %v149_v51 = vsub.s32 %v146_v41, %v136_v40 }
  0x3d   :  { %v142_v48 = vsub.s32 %v139_v39, %v136_v40 }
  0x3e   :  { %109 = vadd.xlane.f32.xlu1 %v108_v44  ;;  %v160_v44 = vadd.s32 4294967264, %v134_v37 }
  0x3f   :  { %85 = vadd.xlane.f32.xlu0 %v84_v45 }
  0x42   :  { %274 = vmax.xlane.f32.xlu1 %v273_v46  ;;  %v167_v46 = vadd.s32 4294967256, %v134_v37 }
  0x43   :  { %250 = vmax.xlane.f32.xlu0 %v249_v47  ;;  %v174_v47 = vadd.s32 4294967248, %v134_v37 }
  0x44   :  { %v861_v56 = vsub.s32 %v167_v46, %v136_v40 }
  0x45   :  { %v863_v57 = vsub.s32 %v174_v47, %v136_v40 }
  0x46   :  { %112 = vadd.xlane.f32.xlu1 %v111_v52 }
  0x47   :  { %88 = vadd.xlane.f32.xlu0 %v87_v53  ;;  %v855_v53 = vsub.s32 %v153_v43, %v136_v40 }
  0x4a   :  { %277 = vmax.xlane.f32.xlu1 %v276_v54  ;;  %v857_v54 = vsub.s32 %v160_v44, %v136_v40 }
  0x4b   :  { %253 = vmax.xlane.f32.xlu0 %v252_v55 }
  0x4e   :  { %115 = vadd.xlane.f32.xlu1 %v114_v60  ;;  %v867_v60 = vsub.s32 %v181_v49, %v136_v40  ;;  %v68_v49 = vld [vmem:[#allocation2] sm:$0x3] }
  0x4f   :  { %91 = vadd.xlane.f32.xlu0 %v90_v61 }
  0x52   :  { %280 = vmax.xlane.f32.xlu1 %v279_v62 }
  0x53   :  { %256 = vmax.xlane.f32.xlu0 %v255_v63 }
  0xa3   :  { %v809_v17 = vpop.xlane.xlu1 %94 }
  0xa4   :  { %v811_v18 = vpop.xlane.xlu0 %70  ;;  %v191_v2 = vrot.slane %v809_v17, %v137_v50 }
  0xa5   :  { %v138_v3 = vrot.slane %v811_v18, %v137_v50 }
  0xa7   :  { %v813_v19 = vpop.xlane.xlu1 %97 }
  0xa8   :  { %v815_v20 = vpop.xlane.xlu0 %73  ;;  %v195_v58 = vrot.slane %v813_v19, %v142_v48 }
  0xa9   :  { %v143_v59 = vrot.slane %v815_v20, %v142_v48 }
  0xaa   :  { %v196_v10 = vsel %vm144_vm5, %v195_v58, %v191_v2  ;;  %v233_v2 = vld [vmem:[#allocation3] sm:$0x3] }
  0xab   :  { %v817_v21 = vpop.xlane.xlu1 %238  ;;  %v145_v11 = vsel %vm144_vm5, %v143_v59, %v138_v3 }
  0xac   :  { %v819_v22 = vpop.xlane.xlu0 %235  ;;  %v305_v61 = vrot.slane %v817_v21, %v142_v48 }
  0xad   :  { %v301_v62 = vrot.slane %v819_v22, %v137_v50 }
  0xaf   :  { %v821_v23 = vpop.xlane.xlu1 %262  ;;  %v306_v13 = vsel %vm144_vm5, %v305_v61, %v301_v62 }
  0xb0   :  { %v823_v24 = vpop.xlane.xlu0 %259  ;;  %v344_v63 = vrot.slane %v821_v23, %v142_v48 }
  0xb1   :  { %v340_v0 = vrot.slane %v823_v24, %v137_v50 }
  0xb3   :  { %v825_v25 = vpop.xlane.xlu1 %100  ;;  %v345_v14 = vsel %vm144_vm5, %v344_v63, %v340_v0 }
  0xb4   :  { %v827_v26 = vpop.xlane.xlu0 %76  ;;  %v200_v4 = vrot.slane %v825_v25, %v149_v51 }
  0xb5   :  { %v150_v5 = vrot.slane %v827_v26, %v149_v51 }
  0xb6   :  { %v201_v18 = vsel %vm151_vm6, %v200_v4, %v196_v10 }
  0xb7   :  { %v829_v27 = vpop.xlane.xlu1 %265  ;;  %v152_v19 = vsel %vm151_vm6, %v150_v5, %v145_v11 }
  0xb8   :  { %v831_v28 = vpop.xlane.xlu0 %241  ;;  %v349_v7 = vrot.slane %v829_v27, %v149_v51 }
  0xb9   :  { %v310_v8 = vrot.slane %v831_v28, %v149_v51 }
  0xba   :  { %v350_v23 = vsel %vm151_vm6, %v349_v7, %v345_v14 }
  0xbb   :  { %v833_v29 = vpop.xlane.xlu1 %103  ;;  %v311_v24 = vsel %vm151_vm6, %v310_v8, %v306_v13 }
  0xbc   :  { %v835_v30 = vpop.xlane.xlu0 %79  ;;  %v205_v9 = vrot.slane %v833_v29, %v855_v53 }
  0xbd   :  { %v157_v12 = vrot.slane %v835_v30, %v855_v53 }
  0xbe   :  { %v206_v25 = vsel %vm158_vm7, %v205_v9, %v201_v18 }
  0xbf   :  { %v837_v31 = vpop.xlane.xlu1 %268  ;;  %v159_v27 = vsel %vm158_vm7, %v157_v12, %v152_v19 }
  0xc0   :  { %v839_v32 = vpop.xlane.xlu0 %244  ;;  %v354_v28 = vrot.slane %v837_v31, %v855_v53 }
  0xc1   :  { %v315_v29 = vrot.slane %v839_v32, %v855_v53 }
  0xc3   :  { %v841_v33 = vpop.xlane.xlu1 %106  ;;  %v316_v50 = vsel %vm158_vm7, %v315_v29, %v311_v24 }
  0xc4   :  { %v843_v35 = vpop.xlane.xlu0 %82  ;;  %v210_v15 = vrot.slane %v841_v33, %v857_v54 }
  0xc5   :  { %v164_v16 = vrot.slane %v843_v35, %v857_v54 }
  0xc6   :  { %v211_v33 = vsel %vm165_vm8, %v210_v15, %v206_v25 }
  0xc7   :  { %v845_v36 = vpop.xlane.xlu1 %271  ;;  %v166_v34 = vsel %vm165_vm8, %v164_v16, %v159_v27 }
  0xc8   :  { %v847_v38 = vpop.xlane.xlu0 %247  ;;  %v359_v35 = vrot.slane %v845_v36, %v857_v54 }
  0xc9   :  { %v320_v37 = vrot.slane %v847_v38, %v857_v54 }
  0xcb   :  { %v849_v42 = vpop.xlane.xlu1 %109  ;;  %v321_v54 = vsel %vm165_vm8, %v320_v37, %v316_v50 }
  0xcc   :  { %v851_v45 = vpop.xlane.xlu0 %85  ;;  %v215_v20 = vrot.slane %v849_v42, %v861_v56 }
  0xcd   :  { %v171_v21 = vrot.slane %v851_v45, %v861_v56  ;;  %v355_v45 = vsel %vm158_vm7, %v354_v28, %v350_v23 }
  0xce   :  { %v216_v40 = vsel %vm172_vm9, %v215_v20, %v211_v33  ;;  %v360_v51 = vsel %vm165_vm8, %v359_v35, %v355_v45 }
  0xcf   :  { %v853_v52 = vpop.xlane.xlu1 %274  ;;  %v173_v31 = vsel %vm172_vm9, %v171_v21, %v166_v34 }
  0xd0   :  { %v859_v55 = vpop.xlane.xlu0 %250  ;;  %v364_v32 = vrot.slane %v853_v52, %v861_v56 }
  0xd1   :  { %v325_v43 = vrot.slane %v859_v55, %v861_v56 }
  0xd2   :  { %v365_v55 = vsel %vm172_vm9, %v364_v32, %v360_v51 }
  0xd3   :  { %v113_v1 = vpop.xlane.xlu1 %112 }
  0xd4   :  { %v89_v6 = vpop.xlane.xlu0 %88  ;;  %v220_v26 = vrot.slane %v113_v1, %v863_v57 }
  0xd5   :  { %v178_v30 = vrot.slane %v89_v6, %v863_v57 }
  0xd6   :  { %v221_v44 = vsel %vm179_vm10, %v220_v26, %v216_v40 }
  0xd7   :  { %v278_v17 = vpop.xlane.xlu1 %277  ;;  %v180_v46 = vsel %vm179_vm10, %v178_v30, %v173_v31 }
  0xd8   :  { %v254_v22 = vpop.xlane.xlu0 %253  ;;  %v369_v36 = vrot.slane %v278_v17, %v863_v57 }
  0xd9   :  { %v330_v47 = vrot.slane %v254_v22, %v863_v57  ;;  %v326_v57 = vsel %vm172_vm9, %v325_v43, %v321_v54 }
  0xda   :  { %v370_v61 = vsel %vm179_vm10, %v369_v36, %v365_v55 }
  0xdb   :  { %v116_v39 = vpop.xlane.xlu1 %115  ;;  %v331_v0 = vsel %vm179_vm10, %v330_v47, %v326_v57 }
  0xdc   :  { %v225_v41 = vrot.slane %v116_v39, %v867_v60  ;;  %v92_v42 = vpop.xlane.xlu0 %91 }
  0xdd   :  { %v185_v38 = vrot.slane %v92_v42, %v867_v60 }
  0xde   :  { %v226_v48 = vsel %vm186_vm11, %v225_v41, %v221_v44 }
  0xdf   :  { %v187_v52 = vsel %vm186_vm11, %v185_v38, %v180_v46  ;;  %v281_v53 = vpop.xlane.xlu1 %280 }
  0xe0   :  { %v228_v56 = vsel %vm227_vm12, %v226_v48, %v187_v52  ;;  %v374_v58 = vrot.slane %v281_v53, %v867_v60  ;;  %v257_v59 = vpop.xlane.xlu0 %256 }
  0xe1   :  { %v335_v62 = vrot.slane %v257_v59, %v867_v60  ;;  %v230_v63 = vadd.f32 %v228_v56, %v68_v49 }
  0xe2   :  { %v375_v1 = vsel %vm186_vm11, %v374_v58, %v370_v61 }
  0xe3   :  { %v336_v3 = vsel %vm186_vm11, %v335_v62, %v331_v0  ;;  %232 = vst.msk [vmem:[#allocation2] sm:$0x3] %vm33_vm0, %v230_v63 }
  0xe4   :  { %v376_v4 = vsel %vm227_vm12, %v375_v1, %v336_v3 }
  0xe5   :  { %v378_v5 = vmax.f32 %v233_v2, %v376_v4 }
  0xe7   :  { %379 = vst.msk [vmem:[#allocation3] sm:$0x3] %vm33_vm0, %v378_v5 }
  0xea   :  { %v383_v6 = vld [vmem:[#allocation2] sm:$0x3] }
  0xeb   :  { %v384_v8 = vmul.f32 0.00390625, %v383_v6 }
  0xee   :  { %v385_v7 = vld [vmem:[#allocation3] sm:$0x3] }
  0xef   :  { %v387_v60 = vrot.slane %v385_v7, 6 }
  0xf1   :  { %v390_v9 = vsel %vm389_vm13, %v384_v8, %v387_v60 }
  0xf2   :  { %628 = vmatmul.mubr.msk.f32.vlgmr.msra.gmra.mrb[0].mxu0 %vm400_vm1, %v390_v9 }
 0x1c5   :  { %v473_v10 = vpop.f32.mrb[0].mxu0 }
 0x1c6   :  { %v477_v11 = vmax.f32 %v473_v10, 0.0  ;;  %v629_v12 = vpop.f32.mrb[1].mxu0 }
 0x1c8   :  { %647 = vmatmul.mubr.msk.f32.vlgmr.msra.gmra.mrb[0].mxu1 %vm478_vm3, %v477_v11 }
 0x29b   :  { %v572_v13 = vpop.f32.mrb[0].mxu1 }
 0x29c   :  { %v577_v14 = vrot.slane %v572_v13, 2  ;;  %v648_v15 = vpop.f32.mrb[1].mxu1 }
 0x29e   :  { %v579_v16 = vadd.f32 %v577_v14, %v572_v13 }
 0x2a0   :  { %v613_v17 = vmul.f32 -1.442695, %v579_v16 }
 0x2a2   :  { %673 = vpow2.f32 %v613_v17 }
 0x2ac   :  { %v674_v18 = vpop.eup %673 }
 0x2ad   :  { %v583_v19 = vadd.f32 1.0, %v674_v18 }
 0x2af   :  { %675 = vrcp.f32 %v583_v19 }
 0x2b9   :  { %v676_v20 = vpop.eup %675 }
 0x2ba   :  { %586 = vst.msk [vmem:[#allocation7] sm:$0x3] %vm33_vm0, %v676_v20 }
 0x2bb   :  { %710 = shalt.err (!%p707_p12)
}
 0x2bc   :  { %s711_s19 = scalar_lea.hbm %s961_s3, 32 }
 0x2bd   :  { %p712_p13 = scmp.ne.s32.totalorder %s961_s3, %s711_s19  ;;  %p715_p0 = scmp.lt.u32.totalorder %s711_s19, %s961_s3 }
 0x2bf   :  { %p717_p1 = pnand %p715_p0, %p712_p13 }
 0x2c1   :  { %720 = shalt.err (!%p717_p1)
}
 0x2c2   :  { %596 = dma.vmem_to_hbm [thread:$0]  %s594_s15, 32, %s961_s3, [#allocation6]  }
 0x2c3   :  { %723 = dma.done.wait [#allocation6], 32  }
 0x2c4   :  { %724 = vsyncadd [#allocation6], 4294967264 }
 0x2c5   :  { %600 = vsyncpa [#allocation5], 1 }
 0x2c6   :  { %601 = vsyncpa [#allocation6], 1 }

</bundles_post_ra>
